<compile_context>
chip_gen: v6e
topology: v6e:2x2x1
jax: 0.10.0
libtpu: 0.0.40
codegen_flags: <defaults>
</compile_context>

<pallas_src>
import jax
import jax.numpy as jnp
from jax.experimental import pallas as pl
from jax.experimental.pallas import tpu as pltpu


def _round_up(x: int, m: int) -> int:
    return ((x + m - 1) // m) * m


def _decoder_kernel(z_ref, w1_ref, b1_ref, w2_ref, b2_ref, o_ref):
    # fc1 + ReLU  (MXU matmul, f32 accumulate)
    h = jnp.dot(z_ref[...], w1_ref[...], preferred_element_type=jnp.float32)
    h = jnp.maximum(h + b1_ref[...], 0.0)           # (TM, Hp) + (1, Hp) broadcast
    # fc2 + sigmoid
    y = jnp.dot(h, w2_ref[...], preferred_element_type=jnp.float32)
    o_ref[...] = jax.nn.sigmoid(y + b2_ref[...]).astype(o_ref.dtype)


def vae_decoder(z, w1, b1, w2, b2, *, batch_tile=256):
    """z: (B, latent); w1: (latent, hidden); w2: (hidden, out); biases (1, dim)."""
    B, K = z.shape
    H = w1.shape[1]
    O = w2.shape[1]

    # Lane-dense padding: features to multiples of 128; batch to a multiple of the
    # batch tile (tile itself is a multiple of 8 sublanes).
    Kp = _round_up(K, 128)
    Hp = _round_up(H, 128)
    Op = _round_up(O, 128)
    TM = min(batch_tile, _round_up(B, 8))
    Bp = _round_up(B, TM)

    zp = jnp.pad(z, ((0, Bp - B), (0, Kp - K)))
    w1p = jnp.pad(w1, ((0, Kp - K), (0, Hp - H)))
    b1p = jnp.pad(b1, ((0, 0), (0, Hp - H)))
    w2p = jnp.pad(w2, ((0, Hp - H), (0, Op - O)))
    b2p = jnp.pad(b2, ((0, 0), (0, Op - O)))

    grid = (Bp // TM,)

    # VMEM footprint: double-buffered z/out tiles + resident weights/biases + h temp.
    itemsize = 4  # f32
    vmem_need = itemsize * (
        2 * TM * Kp            # z tiles (double-buffered)
        + Kp * Hp + Hp         # resident w1, b1
        + Hp * Op + Op         # resident w2, b2
        + 2 * TM * Op          # output tiles (double-buffered)
        + TM * Hp              # intermediate h
    )
    vmem_limit = int(min(max(2 * vmem_need, 4 << 20), 64 << 20))

    cost = pl.CostEstimate(
        flops=2 * Bp * (Kp * Hp + Hp * Op),
        transcendentals=Bp * Op,                    # sigmoid exp per output element
        bytes_accessed=itemsize * (Bp * Kp + Kp * Hp + Hp + Hp * Op + Op + Bp * Op),
    )

    out = pl.pallas_call(
        _decoder_kernel,
        out_shape=jax.ShapeDtypeStruct((Bp, Op), jnp.float32),
        grid=grid,
        in_specs=[
            pl.BlockSpec((TM, Kp), lambda i: (i, 0)),   # batch-tiled activations
            pl.BlockSpec((Kp, Hp), lambda i: (0, 0)),   # weights resident across grid
            pl.BlockSpec((1, Hp), lambda i: (0, 0)),
            pl.BlockSpec((Hp, Op), lambda i: (0, 0)),
            pl.BlockSpec((1, Op), lambda i: (0, 0)),
        ],
        out_specs=pl.BlockSpec((TM, Op), lambda i: (i, 0)),
        compiler_params=pltpu.CompilerParams(
            dimension_semantics=("parallel",),          # megacore-shard the batch axis
            vmem_limit_bytes=vmem_limit,
        ),
        cost_estimate=cost,
    )(zp, w1p, b1p, w2p, b2p)

    return out[:B, :O]


def init_params(key, latent_dim, hidden_dim, output_dim):
    """Deterministic synthetic params (uniform, roughly PyTorch-Linear-style scale)."""
    k1, k2, k3, k4 = jax.random.split(key, 4)
    s1 = 1.0 / jnp.sqrt(latent_dim)
    s2 = 1.0 / jnp.sqrt(hidden_dim)
    w1 = jax.random.uniform(k1, (latent_dim, hidden_dim), jnp.float32, -s1, s1)
    b1 = jax.random.uniform(k2, (1, hidden_dim), jnp.float32, -s1, s1)
    w2 = jax.random.uniform(k3, (hidden_dim, output_dim), jnp.float32, -s2, s2)
    b2 = jax.random.uniform(k4, (1, output_dim), jnp.float32, -s2, s2)
    return w1, b1, w2, b2


def reference(z, w1, b1, w2, b2):
    h = jnp.maximum(z @ w1 + b1, 0.0)
    return jax.nn.sigmoid(h @ w2 + b2)


if __name__ == "__main__":
    latent_dim, hidden_dim, output_dim = 16, 32, 64

    key = jax.random.PRNGKey(0)
    kz, kp, kz2 = jax.random.split(key, 3)
    w1, b1, w2, b2 = init_params(kp, latent_dim, hidden_dim, output_dim)

    # Small-batch case (single grid step).
    batch = 8
    z = jax.random.normal(kz, (batch, latent_dim), jnp.float32)
    out = jax.block_until_ready(vae_decoder(z, w1, b1, w2, b2))
    ref = reference(z, w1, b1, w2, b2)
    assert out.shape == (batch, output_dim)
    assert jnp.allclose(out, ref, atol=1e-5, rtol=1e-5), "mismatch vs reference (small batch)"

    # Batch-tiled case (grid > 1, padded batch) to exercise the pipelined path.
    batch2 = 300
    z2 = jax.random.normal(kz2, (batch2, latent_dim), jnp.float32)
    out2 = jax.block_until_ready(vae_decoder(z2, w1, b1, w2, b2))
    ref2 = reference(z2, w1, b1, w2, b2)
    assert out2.shape == (batch2, output_dim)
    assert jnp.allclose(out2, ref2, atol=1e-5, rtol=1e-5), "mismatch vs reference (tiled batch)"

    print("KERNEL_OK")
</pallas_src>

<mosaic_0001>
module attributes {stable_mosaic.version = 11 : i64} {
  func.func @_decoder_kernel(%arg0: i32, %arg1: memref<8x128xf32, #tpu.memory_space<vmem>>, %arg2: memref<128x128xf32, #tpu.memory_space<vmem>>, %arg3: memref<1x128xf32, #tpu.memory_space<vmem>>, %arg4: memref<128x128xf32, #tpu.memory_space<vmem>>, %arg5: memref<1x128xf32, #tpu.memory_space<vmem>>, %arg6: memref<8x128xf32, #tpu.memory_space<vmem>>) attributes {dimension_semantics = [#tpu.dimension_semantics<parallel>], iteration_bounds = array<i64: 1>, scalar_prefetch = 0 : i64, scratch_operands = 0 : i64, tpu.core_type = #tpu.core_type<tc>, window_params = [{transform_indices = @transform_0, window_bounds = array<i64: 8, 128>}, {pipeline_mode = #tpu.pipeline_mode<synchronous>, transform_indices = @transform_1, window_bounds = array<i64: 128, 128>}, {pipeline_mode = #tpu.pipeline_mode<synchronous>, transform_indices = @transform_2, window_bounds = array<i64: 1, 128>}, {pipeline_mode = #tpu.pipeline_mode<synchronous>, transform_indices = @transform_3, window_bounds = array<i64: 128, 128>}, {pipeline_mode = #tpu.pipeline_mode<synchronous>, transform_indices = @transform_4, window_bounds = array<i64: 1, 128>}, {transform_indices = @transform_5, window_bounds = array<i64: 8, 128>}]} {
    %c0 = arith.constant 0 : index
    %c0_0 = arith.constant 0 : index
    %0 = vector.load %arg1[%c0, %c0_0] : memref<8x128xf32, #tpu.memory_space<vmem>>, vector<8x128xf32>
    %c0_1 = arith.constant 0 : index
    %c0_2 = arith.constant 0 : index
    %1 = vector.load %arg2[%c0_1, %c0_2] : memref<128x128xf32, #tpu.memory_space<vmem>>, vector<128x128xf32>
    %cst = arith.constant dense<0.000000e+00> : vector<8x128xf32>
    %2 = tpu.matmul %0, %1, %cst {dimension_numbers = #tpu.dot_dimension_numbers<[1], [0], [0], [1], [0, 0, 1, 1], [], []>} : vector<8x128xf32>, vector<128x128xf32>, vector<8x128xf32> -> vector<8x128xf32>
    %c0_3 = arith.constant 0 : index
    %c0_4 = arith.constant 0 : index
    %3 = vector.load %arg3[%c0_3, %c0_4] : memref<1x128xf32, #tpu.memory_space<vmem>>, vector<1x128xf32>
    %4 = vector.broadcast %3 : vector<1x128xf32> to vector<8x128xf32>
    %5 = arith.addf %2, %4 : vector<8x128xf32>
    %cst_5 = arith.constant 0.000000e+00 : f32
    %6 = vector.broadcast %cst_5 : f32 to vector<8x128xf32>
    %7 = arith.maximumf %5, %6 : vector<8x128xf32>
    %c0_6 = arith.constant 0 : index
    %c0_7 = arith.constant 0 : index
    %8 = vector.load %arg4[%c0_6, %c0_7] : memref<128x128xf32, #tpu.memory_space<vmem>>, vector<128x128xf32>
    %cst_8 = arith.constant dense<0.000000e+00> : vector<8x128xf32>
    %9 = tpu.matmul %7, %8, %cst_8 {dimension_numbers = #tpu.dot_dimension_numbers<[1], [0], [0], [1], [0, 0, 1, 1], [], []>} : vector<8x128xf32>, vector<128x128xf32>, vector<8x128xf32> -> vector<8x128xf32>
    %c0_9 = arith.constant 0 : index
    %c0_10 = arith.constant 0 : index
    %10 = vector.load %arg5[%c0_9, %c0_10] : memref<1x128xf32, #tpu.memory_space<vmem>>, vector<1x128xf32>
    %11 = vector.broadcast %10 : vector<1x128xf32> to vector<8x128xf32>
    %12 = arith.addf %9, %11 : vector<8x128xf32>
    %13 = arith.negf %12 : vector<8x128xf32>
    %14 = math.exp %13 : vector<8x128xf32>
    %cst_11 = arith.constant 1.000000e+00 : f32
    %15 = vector.broadcast %cst_11 : f32 to vector<8x128xf32>
    %16 = arith.addf %15, %14 : vector<8x128xf32>
    %17 = arith.divf %15, %16 : vector<8x128xf32>
    %c0_12 = arith.constant 0 : index
    %c0_13 = arith.constant 0 : index
    %18 = vector.load %arg6[%c0_12, %c0_13] : memref<8x128xf32, #tpu.memory_space<vmem>>, vector<8x128xf32>
    tpu.vector_store %arg6[%c0_12, %c0_13], %17 {strides = array<i32>} : memref<8x128xf32, #tpu.memory_space<vmem>>, vector<8x128xf32>,
    return
  }
  func.func @transform_0(%arg0: i32) -> (i32, i32) {
    %c0_i32 = arith.constant 0 : i32
    %c0_i32_0 = arith.constant 0 : i32
    return %arg0, %c0_i32 : i32, i32
  }
  func.func @transform_1(%arg0: i32) -> (i32, i32) {
    %c0_i32 = arith.constant 0 : i32
    %c0_i32_0 = arith.constant 0 : i32
    %c0_i32_1 = arith.constant 0 : i32
    return %c0_i32, %c0_i32_0 : i32, i32
  }
  func.func @transform_2(%arg0: i32) -> (i32, i32) {
    %c0_i32 = arith.constant 0 : i32
    %c0_i32_0 = arith.constant 0 : i32
    %c0_i32_1 = arith.constant 0 : i32
    return %c0_i32, %c0_i32_0 : i32, i32
  }
  func.func @transform_3(%arg0: i32) -> (i32, i32) {
    %c0_i32 = arith.constant 0 : i32
    %c0_i32_0 = arith.constant 0 : i32
    %c0_i32_1 = arith.constant 0 : i32
    return %c0_i32, %c0_i32_0 : i32, i32
  }
  func.func @transform_4(%arg0: i32) -> (i32, i32) {
    %c0_i32 = arith.constant 0 : i32
    %c0_i32_0 = arith.constant 0 : i32
    %c0_i32_1 = arith.constant 0 : i32
    return %c0_i32, %c0_i32_0 : i32, i32
  }
  func.func @transform_5(%arg0: i32) -> (i32, i32) {
    %c0_i32 = arith.constant 0 : i32
    %c0_i32_0 = arith.constant 0 : i32
    return %arg0, %c0_i32 : i32, i32
  }
}

</mosaic_0001>

<bundles_post_ra>
// kernel: tpu_custom_call.1
= control target key start
LH: loop header
LB: loop body
LE: loop exit
PB: predicated region body
PF: predicated region fallthrough
CT: control target
= control target key end

     0   :  { %10 = vsyncpa [#allocation3], 0  ;;  %s566_s0 = inlined_call_operand.hbm [shape: f32[8,128], index: 0, kind: input, shape index: {}]   ;;  %s567_s1 = inlined_call_operand.hbm [shape: f32[128,128], index: 1, kind: input, shape index: {}]   ;;  %s568_s2 = inlined_call_operand.vmem [shape: f32[1,128], index: 2, kind: input, shape index: {}]   ;;  %s569_s3 = inlined_call_operand.hbm [shape: f32[128,128], index: 3, kind: input, shape index: {}]   ;;  %s570_s4 = inlined_call_operand.vmem [shape: f32[1,128], index: 4, kind: input, shape index: {}]   ;;  %s571_s5 = inlined_call_operand.hbm [shape: f32[8,128], index: 5, kind: output, shape index: {}]  }
   0x1   :  { %11 = vsyncpa [#allocation6], 0 }
   0x2   :  { %12 = vsyncpa [#allocation4], 0  ;;  %s476_s18 = smov [#allocation5]  }
   0x3   :  { %s28_s19 = sshll.u32 %s476_s18, 4  ;;  %s29_s19 = int_to_ptr.vmem [resolvable:$true] %s28_s19 }
   0x4   :  { %s398_s20 = scalar_lea.vmem %s29_s19, 2048  ;;  %p403_p1 = scmp.lt.s32.totalorder %s29_s19, %s29_s19 }
   0x5   :  { %p399_p0 = scmp.ne.s32.totalorder %s29_s19, %s398_s20  ;;  %p404_p2 = scmp.lt.s32.totalorder %s398_s20, %s398_s20 }
   0x7   :  { %p405_p3 = por %p404_p2, %p403_p1 }
   0x9   :  { %p406_p4 = pnand %p405_p3, %p399_p0 }
   0xb   :  { %409 = shalt.err (!%p406_p4)
}
   0xc   :  { %s477_s21 = smov 128   ;;  %s478_s22 = smov 8  }
   0xd   :  { %34 = dma.hbm_to_vmem [thread:$0]  %s567_s1, 2048, %s29_s19, [#allocation6], %s477_s21, %s477_s21, %s478_s22  }
   0xe   :  { %s479_s25 = smov [#allocation2]   ;;  %s480_s27 = smov [#allocation7]  }
   0xf   :  { %s19_s26 = sshll.u32 %s479_s25, 4  ;;  %s42_s28 = sshll.u32 %s480_s27, 4  ;;  %s20_s26 = int_to_ptr.vmem [resolvable:$true] %s19_s26  ;;  %s43_s28 = int_to_ptr.vmem [resolvable:$true] %s42_s28 }
  0x10   :  { %s418_s29 = scalar_lea.vmem %s20_s26, 128  ;;  %p423_p6 = scmp.lt.s32.totalorder %s20_s26, %s20_s26 }
  0x11   :  { %p419_p5 = scmp.ne.s32.totalorder %s20_s26, %s418_s29  ;;  %p424_p7 = scmp.lt.s32.totalorder %s418_s29, %s418_s29 }
  0x13   :  { %p425_p8 = por %p424_p7, %p423_p6 }
  0x15   :  { %p426_p9 = pnand %p425_p8, %p419_p5 }
  0x17   :  { %429 = shalt.err (!%p426_p9)
}
  0x18   :  { %22 = dma.hbm_to_vmem [thread:$0]  %s566_s0, 128, %s20_s26, [#allocation3]  }
  0x19   :  { %s438_s7 = scalar_lea.vmem %s43_s28, 2048  ;;  %p443_p11 = scmp.lt.s32.totalorder %s43_s28, %s43_s28 }
  0x1a   :  { %p439_p10 = scmp.ne.s32.totalorder %s43_s28, %s438_s7  ;;  %p444_p12 = scmp.lt.s32.totalorder %s438_s7, %s438_s7 }
  0x1c   :  { %p445_p13 = por %p444_p12, %p443_p11 }
  0x1e   :  { %p446_p0 = pnand %p445_p13, %p439_p10 }
  0x20   :  { %449 = shalt.err (!%p446_p0)
}
  0x21   :  { %48 = dma.hbm_to_vmem [thread:$0]  %s569_s3, 2048, %s43_s28, [#allocation6], %s477_s21, %s477_s21, %s478_s22  }
  0x22   :  { %470 = dma.done.wait [#allocation3], 128  }
  0x23   :  { %471 = vsyncadd [#allocation3], 4294967168 }
  0x24   :  { %472 = dma.done.wait [#allocation6], 4096  }
  0x25   :  { %473 = vsyncadd [#allocation6], 4294963200  ;;  %v481_v0 = vmov 0.0   ;;  %vm482_vm0 = vmmov 0   ;;  %v76_v1 = vld [vmem:[#allocation5 + $0x78] sm:$0xff]  ;;  %v75_v2 = vld [vmem:[#allocation5 + $0x70] sm:$0xff] }
  0x26   :  { %308 = vmatprep.subr.mxu0 %v481_v0  ;;  %340 = vmatprep.mubr.msk.f32.mxu0 %vm482_vm0, %v481_v0  ;;  %v74_v3 = vld [vmem:[#allocation5 + $0x68] sm:$0xff]  ;;  %v73_v4 = vld [vmem:[#allocation5 + $0x60] sm:$0xff]  ;;  %v170_v5 = vld [vmem:[#allocation7 + $0x78] sm:$0xff]  ;;  %s483_s11 = smov [#allocation8]  }
  0x27   :  { %343 = vmatprep.subr.mxu1 %v481_v0  ;;  %375 = vmatprep.mubr.msk.f32.mxu1 %vm482_vm0, %v481_v0  ;;  %v72_v6 = vld [vmem:[#allocation5 + $0x58] sm:$0xff]  ;;  %v169_v7 = vld [vmem:[#allocation7 + $0x70] sm:$0xff]  ;;  %v168_v8 = vld [vmem:[#allocation7 + $0x68] sm:$0xff]  ;;  %s261_s12 = sshll.u32 %s483_s11, 4  ;;  %s262_s12 = int_to_ptr.vmem [resolvable:$true] %s261_s12 }
  0x28   :  { %309 = vmatpush3.msra.mxu0 %v76_v1  ;;  %344 = vmatpush3.msra.mxu1 %v170_v5  ;;  %v71_v9 = vld [vmem:[#allocation5 + $0x50] sm:$0xff]  ;;  %v167_v10 = vld [vmem:[#allocation7 + $0x60] sm:$0xff]  ;;  %v70_v11 = vld [vmem:[#allocation5 + $0x48] sm:$0xff]  ;;  %p455_p2 = scmp.lt.s32.totalorder %s262_s12, %s262_s12 }
  0x29   :  { %310 = vmatprep.subr.mxu0 %v481_v0  ;;  %345 = vmatprep.subr.mxu1 %v481_v0  ;;  %v166_v12 = vld [vmem:[#allocation7 + $0x58] sm:$0xff]  ;;  %v69_v13 = vld [vmem:[#allocation5 + $0x40] sm:$0xff]  ;;  %v165_v14 = vld [vmem:[#allocation7 + $0x50] sm:$0xff] }
  0x2a   :  { %311 = vmatpush3.msra.mxu0 %v75_v2  ;;  %346 = vmatpush3.msra.mxu1 %v169_v7  ;;  %v68_v15 = vld [vmem:[#allocation5 + $0x38] sm:$0xff]  ;;  %v164_v16 = vld [vmem:[#allocation7 + $0x48] sm:$0xff]  ;;  %v67_v17 = vld [vmem:[#allocation5 + $0x30] sm:$0xff] }
  0x2b   :  { %312 = vmatprep.subr.mxu0 %v481_v0  ;;  %347 = vmatprep.subr.mxu1 %v481_v0  ;;  %v163_v18 = vld [vmem:[#allocation7 + $0x40] sm:$0xff]  ;;  %v66_v19 = vld [vmem:[#allocation5 + $0x28] sm:$0xff]  ;;  %v162_v20 = vld [vmem:[#allocation7 + $0x38] sm:$0xff] }
  0x2c   :  { %313 = vmatpush3.msra.mxu0 %v74_v3  ;;  %348 = vmatpush3.msra.mxu1 %v168_v8  ;;  %v65_v21 = vld [vmem:[#allocation5 + $0x20] sm:$0xff]  ;;  %v161_v22 = vld [vmem:[#allocation7 + $0x30] sm:$0xff]  ;;  %v64_v23 = vld [vmem:[#allocation5 + $0x18] sm:$0xff] }
  0x2d   :  { %314 = vmatprep.subr.mxu0 %v481_v0  ;;  %349 = vmatprep.subr.mxu1 %v481_v0  ;;  %v160_v24 = vld [vmem:[#allocation7 + $0x28] sm:$0xff]  ;;  %v63_v25 = vld [vmem:[#allocation5 + $0x10] sm:$0xff]  ;;  %v159_v26 = vld [vmem:[#allocation7 + $0x20] sm:$0xff] }
  0x2e   :  { %315 = vmatpush3.msra.mxu0 %v73_v4  ;;  %350 = vmatpush3.msra.mxu1 %v167_v10  ;;  %v62_v27 = vld [vmem:[#allocation5 + $0x8] sm:$0xff]  ;;  %v158_v28 = vld [vmem:[#allocation7 + $0x18] sm:$0xff]  ;;  %v61_v29 = vld [vmem:[#allocation5] sm:$0xff] }
  0x2f   :  { %316 = vmatprep.subr.mxu0 %v481_v0  ;;  %351 = vmatprep.subr.mxu1 %v481_v0  ;;  %v60_v30 = vld [vmem:[#allocation2] sm:$0xff]  ;;  %v157_v31 = vld [vmem:[#allocation7 + $0x10] sm:$0xff]  ;;  %v156_v32 = vld [vmem:[#allocation7 + $0x8] sm:$0xff] }
  0x30   :  { %317 = vmatpush3.msra.mxu0 %v72_v6  ;;  %352 = vmatpush3.msra.mxu1 %v166_v12  ;;  %v155_v33 = vld [vmem:[#allocation7] sm:$0xff]  ;;  %v271_v34 = vld [vmem:[%s568_s2] ss:$0 sm:$0xff]  ;;  %s450_s2 = scalar_lea.vmem %s262_s12, 128 }
  0x31   :  { %318 = vmatprep.subr.mxu0 %v481_v0  ;;  %353 = vmatprep.subr.mxu1 %v481_v0  ;;  %v272_v39 = vld [vmem:[%s570_s4] ss:$0 sm:$0xff]  ;;  %p451_p1 = scmp.ne.s32.totalorder %s262_s12, %s450_s2  ;;  %p456_p3 = scmp.lt.s32.totalorder %s450_s2, %s450_s2 }
  0x32   :  { %319 = vmatpush3.msra.mxu0 %v71_v9  ;;  %354 = vmatpush3.msra.mxu1 %v165_v14 }
  0x33   :  { %320 = vmatprep.subr.mxu0 %v481_v0  ;;  %355 = vmatprep.subr.mxu1 %v481_v0  ;;  %p457_p4 = por %p456_p3, %p455_p2 }
  0x34   :  { %321 = vmatpush3.msra.mxu0 %v70_v11  ;;  %356 = vmatpush3.msra.mxu1 %v164_v16 }
  0x35   :  { %322 = vmatprep.subr.mxu0 %v481_v0  ;;  %357 = vmatprep.subr.mxu1 %v481_v0  ;;  %p458_p5 = pnand %p457_p4, %p451_p1 }
  0x36   :  { %323 = vmatpush3.msra.mxu0 %v69_v13  ;;  %358 = vmatpush3.msra.mxu1 %v163_v18 }
  0x37   :  { %324 = vmatprep.subr.mxu0 %v481_v0  ;;  %359 = vmatprep.subr.mxu1 %v481_v0 }
  0x38   :  { %325 = vmatpush3.msra.mxu0 %v68_v15  ;;  %360 = vmatpush3.msra.mxu1 %v162_v20 }
  0x39   :  { %326 = vmatprep.subr.mxu0 %v481_v0  ;;  %361 = vmatprep.subr.mxu1 %v481_v0 }
  0x3a   :  { %327 = vmatpush3.msra.mxu0 %v67_v17  ;;  %362 = vmatpush3.msra.mxu1 %v161_v22 }
  0x3b   :  { %328 = vmatprep.subr.mxu0 %v481_v0  ;;  %363 = vmatprep.subr.mxu1 %v481_v0 }
  0x3c   :  { %329 = vmatpush3.msra.mxu0 %v66_v19  ;;  %364 = vmatpush3.msra.mxu1 %v160_v24 }
  0x3d   :  { %330 = vmatprep.subr.mxu0 %v481_v0  ;;  %365 = vmatprep.subr.mxu1 %v481_v0 }
  0x3e   :  { %331 = vmatpush3.msra.mxu0 %v65_v21  ;;  %366 = vmatpush3.msra.mxu1 %v159_v26 }
  0x3f   :  { %332 = vmatprep.subr.mxu0 %v481_v0  ;;  %367 = vmatprep.subr.mxu1 %v481_v0 }
  0x40   :  { %333 = vmatpush3.msra.mxu0 %v64_v23  ;;  %368 = vmatpush3.msra.mxu1 %v158_v28 }
  0x41   :  { %334 = vmatprep.subr.mxu0 %v481_v0  ;;  %369 = vmatprep.subr.mxu1 %v481_v0 }
  0x42   :  { %335 = vmatpush3.msra.mxu0 %v63_v25  ;;  %370 = vmatpush3.msra.mxu1 %v157_v31 }
  0x43   :  { %336 = vmatprep.subr.mxu0 %v481_v0  ;;  %371 = vmatprep.subr.mxu1 %v481_v0 }
  0x44   :  { %337 = vmatpush3.msra.mxu0 %v62_v27  ;;  %372 = vmatpush3.msra.mxu1 %v156_v32 }
  0x45   :  { %338 = vmatprep.subr.mxu0 %v481_v0  ;;  %373 = vmatprep.subr.mxu1 %v481_v0 }
  0x46   :  { %339 = vmatpush3.msra.mxu0 %v61_v29  ;;  %374 = vmatpush3.msra.mxu1 %v155_v33 }
  0x47   :  { %341 = vmatmul.mubr.f32.vlgmr.msra.gmra.mxu0 %v60_v30 }
 0x107   :  { %v150_v35 = vpop.f32.mrf.mxu0 }
 0x108   :  { %v151_v36 = vadd.f32 %v271_v34, %v150_v35 }
 0x109   :  { %v342_v37 = vpop.f32.mrf.mxu0 }
 0x10a   :  { %v154_v38 = vmax.f32 %v151_v36, 0.0 }
 0x10c   :  { %376 = vmatmul.mubr.f32.vlgmr.msra.gmra.mxu1 %v154_v38 }
 0x1cc   :  { %v244_v40 = vpop.f32.mrf.mxu1 }
 0x1cd   :  { %v245_v41 = vadd.f32 %v272_v39, %v244_v40 }
 0x1ce   :  { %v377_v42 = vpop.f32.mrf.mxu1 }
 0x1cf   :  { %v273_v43 = vmul.f32 -1.442695, %v245_v41 }
 0x1d1   :  { %386 = vpow2.f32 %v273_v43 }
 0x1de   :  { %v387_v44 = vpop.eup %386 }
 0x1df   :  { %v251_v45 = vadd.f32 1.0, %v387_v44 }
 0x1e1   :  { %388 = vrcp.f32 %v251_v45 }
 0x1ee   :  { %v389_v46 = vpop.eup %388 }
 0x1ef   :  { %254 = vst [vmem:[#allocation8] sm:$0xff] %v389_v46 }
 0x1f0   :  { %461 = shalt.err (!%p458_p5)
}
 0x1f1   :  { %264 = dma.vmem_to_hbm [thread:$0]  %s262_s12, 128, %s571_s5, [#allocation4]  }
 0x1f2   :  { %474 = dma.done.wait [#allocation4], 128  }
 0x1f3   :  { %475 = vsyncadd [#allocation4], 4294967168 }
 0x1f4   :  { %268 = vsyncpa [#allocation3], 1 }
 0x1f5   :  { %269 = vsyncpa [#allocation6], 1 }
 0x1f6   :  { %270 = vsyncpa [#allocation4], 1 }

</bundles_post_ra>
